<compile_context>
chip_gen: v6e
topology: v6e:2x2x1
jax: 0.10.0
libtpu: 0.0.40
codegen_flags: <defaults>
</compile_context>

<pallas_src>
import jax
import jax.numpy as jnp
from jax.experimental import pallas as pl
from jax.experimental.pallas import tpu as pltpu

NEG_SLOPE = 0.2
NEG_INF = -1e30


def _round_up(x, m):
    return (x + m - 1) // m * m


def _project_kernel(x_ref, w_ref, a_ref, feat_ref, e_ref):
    # feat = x @ W_all -> (T_n, H*D): one lane-dense MXU matmul for all heads.
    feat = jnp.dot(x_ref[...], w_ref[...], preferred_element_type=jnp.float32)
    feat_ref[...] = feat
    # [el | er] = feat @ [A_l | A_r] (block-diagonal (H*D, 2H) operand):
    # per-head attention reductions routed through the MXU in ONE dot / store.
    e_ref[...] = jnp.dot(feat, a_ref[...], preferred_element_type=jnp.float32)


def _make_agg_kernel(num_heads, d_out, n_cls):
    H = num_heads
    DC = d_out + n_cls          # feat + label lanes
    DC1 = DC + 1                # + ones column (row-sum / softmax denominator)

    def kernel(el_ref, er_ref, adj_ref, fy_ref, out_ref, m_sc, acc_sc):
        # grid = (dst_tiles, src_tiles); src (reduction) axis innermost.
        j = pl.program_id(1)

        @pl.when(j == 0)
        def _():
            m_sc[...] = jnp.full(m_sc.shape, NEG_INF, dtype=m_sc.dtype)
            acc_sc[...] = jnp.zeros(acc_sc.shape, dtype=acc_sc.dtype)

        # Adjacency (int8) is fetched ONCE per (dst, src) tile; the mask
        # compare is shared by all heads.
        mask = adj_ref[...] > 0                      # (T_dst, T_src)
        el_all = el_ref[...]                         # (H, T_src)  src-side scores
        er_all = er_ref[...]                         # (T_dst, H)  dst-side scores

        for h in range(H):                           # heads folded into the body
            er = er_all[:, h:h + 1]                  # (T_dst, 1)
            el = el_all[h:h + 1, :]                  # (1, T_src)
            e = er + el                              # (T_dst, T_src)
            e = jnp.maximum(e, NEG_SLOPE * e)        # leaky_relu without a select
            e = jnp.where(mask, e, NEG_INF)

            m_prev = m_sc[h]                         # (T_dst, 1)
            m_new = jnp.maximum(m_prev, jnp.max(e, axis=-1, keepdims=True))
            alpha = jnp.exp(m_prev - m_new)
            # NEG_INF is finite, so the explicit zeroing of masked entries is
            # required (a dst row whose running max is still NEG_INF would get
            # exp(0)=1 on masked src entries otherwise); the ones-column
            # row-sum below consumes p directly, so this also keeps the
            # denominator correct.
            p = jnp.where(mask, jnp.exp(e - m_new), 0.0)

            # Unnormalized attention times fused [feat_h | y | 1]: ONE MXU pass
            # per head; the last output column accumulates the softmax
            # denominator, so no per-step XLU row-sum is needed.  Kept in f32:
            # at this output width the MXU is nowhere near the binding slot.
            acc_sc[h] = alpha * acc_sc[h] + jnp.dot(
                p, fy_ref[h], preferred_element_type=jnp.float32)
            m_sc[h] = m_new

        @pl.when(j == pl.num_programs(1) - 1)
        def _():
            # Deferred softmax normalization; lane-dense (T_dst, H*DC) store.
            for h in range(H):
                acc = acc_sc[h]                              # (T_dst, DC1)
                l = jnp.maximum(acc[:, DC:DC + 1], 1e-30)    # zero in-degree / pad rows
                inv = pl.reciprocal(l, approx=False)
                out_ref[:, h * DC:(h + 1) * DC] = acc[:, :DC] * inv

    return kernel


def gat_conv_forward(x, adj, y, w, attn_l, attn_r, bias):
    """x:(N,F_in)  adj:(N,N) with adj[dst,src]=1 for edge src->dst  y:(N,C)
    w:(H*D,F_in)  attn_*:(1,H,D)  bias:(H*D,)

    Returns (rst:(N,H,D), y_pred:(N,H,C)) — the DGL module semantics in eval
    mode (residual=False, activation=None, all dropouts = 0).
    """
    N, F_in = x.shape
    C = y.shape[-1]
    _, H, D = attn_l.shape
    HD = H * D
    DC = D + C
    DC1 = DC + 1
    f32 = jnp.float32

    # ---- tiling: adjacency is the only O(N^2) operand; stream it once with
    #      large tiles.  A 512x1024 int8 adj tile is 512 KiB (1 MiB double-
    #      buffered); total kernel-2 VMEM stays comfortably inside every
    #      generation's budget (incl. v7x's 64 MiB physical VMEM).
    N_pad = _round_up(N, 128)
    if N_pad <= 1024:
        T_dst = T_src = N_pad
    else:
        N_pad = _round_up(N, 512)
        T_dst = 512                                   # >=2 dst tiles -> megacore split
        T_src = 1024 if N_pad % 1024 == 0 else 512
    T_n = next(t for t in (512, 256, 128) if N_pad % t == 0)

    # ---- pad / repack inputs (done once in XLA; O(N) or one O(N^2) cast).
    x_p = jnp.zeros((N_pad, F_in), f32).at[:N].set(x.astype(f32))
    y_p = jnp.zeros((N_pad, C), f32).at[:N].set(y.astype(f32))
    adj_p = jnp.zeros((N_pad, N_pad), jnp.int8).at[:N, :N].set(
        (adj > 0).astype(jnp.int8))                   # 1-byte mask stream

    w_all = jnp.transpose(w.astype(f32))              # (F_in, H*D)
    eye_h = jnp.eye(H, dtype=f32)
    a_l = (attn_l.reshape(H, D).astype(f32)[:, :, None] *
           eye_h[:, None, :]).reshape(HD, H)          # block-diag (H*D, H)
    a_r = (attn_r.reshape(H, D).astype(f32)[:, :, None] *
           eye_h[:, None, :]).reshape(HD, H)
    a_lr = jnp.concatenate([a_l, a_r], axis=1)        # (H*D, 2H): single dot

    # ---- kernel 1: fused multi-head projection + attention-score reductions.
    feat, e_all = pl.pallas_call(
        _project_kernel,
        out_shape=(jax.ShapeDtypeStruct((N_pad, HD), f32),
                   jax.ShapeDtypeStruct((N_pad, 2 * H), f32)),
        grid=(N_pad // T_n,),
        in_specs=[
            pl.BlockSpec((T_n, F_in), lambda i: (i, 0)),
            pl.BlockSpec((F_in, HD), lambda i: (0, 0)),
            pl.BlockSpec((HD, 2 * H), lambda i: (0, 0)),
        ],
        out_specs=(
            pl.BlockSpec((T_n, HD), lambda i: (i, 0)),
            pl.BlockSpec((T_n, 2 * H), lambda i: (i, 0)),
        ),
        compiler_params=pltpu.CompilerParams(
            dimension_semantics=("parallel",)),
    )(x_p, w_all, a_lr)

    # ---- small repacks in XLA (O(N*H*(D+C)), negligible vs the O(N^2) adj).
    el_hn = jnp.transpose(e_all[:, :H])               # (H, N_pad)  src scores
    er_nh = e_all[:, H:]                              # (N_pad, H)  dst scores (lane-dense)
    feat_hnd = jnp.transpose(feat.reshape(N_pad, H, D), (1, 0, 2))
    fy = jnp.concatenate(
        [feat_hnd,
         jnp.broadcast_to(y_p[None], (H, N_pad, C)),
         jnp.ones((H, N_pad, 1), f32)],               # ones col -> row-sum via MXU
        axis=-1)                                      # (H, N_pad, D+C+1)

    # ---- kernel 2: tiled edge-softmax + fused feature/label aggregation;
    #      all heads handled per adjacency tile -> single pass over adj.
    out_flat = pl.pallas_call(
        _make_agg_kernel(H, D, C),
        out_shape=jax.ShapeDtypeStruct((N_pad, H * DC), f32),
        grid=(N_pad // T_dst, N_pad // T_src),
        in_specs=[
            pl.BlockSpec((H, T_src), lambda i, j: (0, j)),          # el (src rows)
            pl.BlockSpec((T_dst, H), lambda i, j: (i, 0)),          # er (dst rows)
            pl.BlockSpec((T_dst, T_src), lambda i, j: (i, j)),      # adj (int8)
            pl.BlockSpec((H, T_src, DC1), lambda i, j: (0, j, 0)),  # [feat|y|1]
        ],
        out_specs=pl.BlockSpec((T_dst, H * DC), lambda i, j: (i, 0)),
        scratch_shapes=[
            pltpu.VMEM((H, T_dst, 1), f32),       # running max m (per head)
            pltpu.VMEM((H, T_dst, DC1), f32),     # fused (feat|label|denom) acc
        ],
        compiler_params=pltpu.CompilerParams(
            dimension_semantics=("parallel", "arbitrary"),
            vmem_limit_bytes=40 * 1024 * 1024),   # headroom vs v7x's 64 MiB VMEM
    )(el_hn, er_nh, adj_p, fy)

    out = out_flat[:N].reshape(N, H, DC)              # (N, H, D+C)
    rst = out[:, :, :D] + bias.reshape(1, H, D).astype(f32)
    y_pred = out[:, :, D:]
    return rst, y_pred


def _reference(x, adj, y, w, attn_l, attn_r, bias):
    """Pure-JAX reference mirroring the PyTorch/DGL forward."""
    N, F_in = x.shape
    _, H, D = attn_l.shape
    feat = (x @ w.T).reshape(N, H, D)                            # (N,H,D)
    el = jnp.sum(feat * attn_l, axis=-1)                         # (N,H)
    er = jnp.sum(feat * attn_r, axis=-1)                         # (N,H)
    e = er[:, None, :] + el[None, :, :]                          # (dst,src,H)
    e = jnp.where(e >= 0, e, NEG_SLOPE * e)
    mask = adj[:, :, None] > 0
    e = jnp.where(mask, e, -1e30)
    e = e - jnp.max(e, axis=1, keepdims=True)
    p = jnp.where(mask, jnp.exp(e), 0.0)
    a = p / jnp.sum(p, axis=1, keepdims=True)                    # (dst,src,H)
    rst = jnp.einsum('dsh,shf->dhf', a, feat) + bias.reshape(1, H, D)
    y_pred = jnp.einsum('dsh,sc->dhc', a, y)
    return rst, y_pred


if __name__ == "__main__":
    # Small synthetic problem: N nodes, F_in input feats, H heads, D out feats,
    # C label classes.
    N, F_IN, H, D, C = 64, 32, 4, 16, 8
    key = jax.random.PRNGKey(0)
    k_x, k_w, k_al, k_ar, k_adj, k_y = jax.random.split(key, 6)

    x = jax.random.normal(k_x, (N, F_IN), dtype=jnp.float32)

    # Deterministic parameter init (xavier-normal-like, gain=sqrt(2) per
    # reset_parameters); bias initialized to 0 per nn.init.constant_.
    gain = jnp.sqrt(2.0)
    w_std = gain * jnp.sqrt(2.0 / (F_IN + H * D))
    w = w_std * jax.random.normal(k_w, (H * D, F_IN), dtype=jnp.float32)
    a_std = gain * jnp.sqrt(2.0 / (H * D + D))
    attn_l = a_std * jax.random.normal(k_al, (1, H, D), dtype=jnp.float32)
    attn_r = a_std * jax.random.normal(k_ar, (1, H, D), dtype=jnp.float32)
    bias = jnp.zeros((H * D,), dtype=jnp.float32)

    # Random sparse-ish graph as dense adjacency adj[dst, src]; add self-loops
    # so every node has in-degree >= 1 (the module would raise DGLError
    # otherwise).  The kernel additionally clamps the softmax denominator, so
    # zero-in-degree rows produce bias-only outputs instead of NaNs.
    # TODO(synk): zero-in-degree runtime check (DGLError) not reproduced in-kernel.
    adj = (jax.random.uniform(k_adj, (N, N)) < 0.15).astype(jnp.float32)
    adj = jnp.maximum(adj, jnp.eye(N, dtype=jnp.float32))

    # One-hot soft labels for the label-propagation branch.
    y = jax.nn.one_hot(jax.random.randint(k_y, (N,), 0, C), C,
                       dtype=jnp.float32)

    rst, y_pred = gat_conv_forward(x, adj, y, w, attn_l, attn_r, bias)
    jax.block_until_ready((rst, y_pred))

    rst_ref, yp_ref = _reference(x, adj, y, w, attn_l, attn_r, bias)
    assert rst.shape == (N, H, D) and y_pred.shape == (N, H, C)
    assert jnp.allclose(rst, rst_ref, atol=1e-4, rtol=1e-4)
    assert jnp.allclose(y_pred, yp_ref, atol=1e-4, rtol=1e-4)

    print("KERNEL_OK")
</pallas_src>

<mosaic_0001>
module attributes {stable_mosaic.version = 11 : i64} {
  func.func @_project_kernel(%arg0: i32, %arg1: memref<128x32xf32, #tpu.memory_space<vmem>>, %arg2: memref<32x64xf32, #tpu.memory_space<vmem>>, %arg3: memref<64x8xf32, #tpu.memory_space<vmem>>, %arg4: memref<128x64xf32, #tpu.memory_space<vmem>>, %arg5: memref<128x8xf32, #tpu.memory_space<vmem>>) attributes {dimension_semantics = [#tpu.dimension_semantics<parallel>], iteration_bounds = array<i64: 1>, scalar_prefetch = 0 : i64, scratch_operands = 0 : i64, tpu.core_type = #tpu.core_type<tc>, window_params = [{transform_indices = @transform_0, window_bounds = array<i64: 128, 32>}, {pipeline_mode = #tpu.pipeline_mode<synchronous>, transform_indices = @transform_1, window_bounds = array<i64: 32, 64>}, {pipeline_mode = #tpu.pipeline_mode<synchronous>, transform_indices = @transform_2, window_bounds = array<i64: 64, 8>}, {transform_indices = @transform_3, window_bounds = array<i64: 128, 64>}, {transform_indices = @transform_4, window_bounds = array<i64: 128, 8>}]} {
    %c0 = arith.constant 0 : index
    %c0_0 = arith.constant 0 : index
    %0 = vector.load %arg1[%c0, %c0_0] : memref<128x32xf32, #tpu.memory_space<vmem>>, vector<128x32xf32>
    %c0_1 = arith.constant 0 : index
    %c0_2 = arith.constant 0 : index
    %1 = vector.load %arg2[%c0_1, %c0_2] : memref<32x64xf32, #tpu.memory_space<vmem>>, vector<32x64xf32>
    %cst = arith.constant dense<0.000000e+00> : vector<128x64xf32>
    %2 = tpu.matmul %0, %1, %cst {dimension_numbers = #tpu.dot_dimension_numbers<[1], [0], [0], [1], [0, 0, 1, 1], [], []>} : vector<128x32xf32>, vector<32x64xf32>, vector<128x64xf32> -> vector<128x64xf32>
    %c0_3 = arith.constant 0 : index
    %c0_4 = arith.constant 0 : index
    %3 = vector.load %arg4[%c0_3, %c0_4] : memref<128x64xf32, #tpu.memory_space<vmem>>, vector<128x64xf32>
    tpu.vector_store %arg4[%c0_3, %c0_4], %2 {strides = array<i32>} : memref<128x64xf32, #tpu.memory_space<vmem>>, vector<128x64xf32>,
    %c0_5 = arith.constant 0 : index
    %c0_6 = arith.constant 0 : index
    %4 = vector.load %arg3[%c0_5, %c0_6] : memref<64x8xf32, #tpu.memory_space<vmem>>, vector<64x8xf32>
    %cst_7 = arith.constant dense<0.000000e+00> : vector<128x8xf32>
    %5 = tpu.matmul %2, %4, %cst_7 {dimension_numbers = #tpu.dot_dimension_numbers<[1], [0], [0], [1], [0, 0, 1, 1], [], []>} : vector<128x64xf32>, vector<64x8xf32>, vector<128x8xf32> -> vector<128x8xf32>
    %c0_8 = arith.constant 0 : index
    %c0_9 = arith.constant 0 : index
    %6 = vector.load %arg5[%c0_8, %c0_9] : memref<128x8xf32, #tpu.memory_space<vmem>>, vector<128x8xf32>
    tpu.vector_store %arg5[%c0_8, %c0_9], %5 {strides = array<i32>} : memref<128x8xf32, #tpu.memory_space<vmem>>, vector<128x8xf32>,
    return
  }
  func.func @transform_0(%arg0: i32) -> (i32, i32) {
    %c0_i32 = arith.constant 0 : i32
    %c0_i32_0 = arith.constant 0 : i32
    return %arg0, %c0_i32 : i32, i32
  }
  func.func @transform_1(%arg0: i32) -> (i32, i32) {
    %c0_i32 = arith.constant 0 : i32
    %c0_i32_0 = arith.constant 0 : i32
    %c0_i32_1 = arith.constant 0 : i32
    return %c0_i32, %c0_i32_0 : i32, i32
  }
  func.func @transform_2(%arg0: i32) -> (i32, i32) {
    %c0_i32 = arith.constant 0 : i32
    %c0_i32_0 = arith.constant 0 : i32
    %c0_i32_1 = arith.constant 0 : i32
    return %c0_i32, %c0_i32_0 : i32, i32
  }
  func.func @transform_3(%arg0: i32) -> (i32, i32) {
    %c0_i32 = arith.constant 0 : i32
    %c0_i32_0 = arith.constant 0 : i32
    return %arg0, %c0_i32 : i32, i32
  }
  func.func @transform_4(%arg0: i32) -> (i32, i32) {
    %c0_i32 = arith.constant 0 : i32
    %c0_i32_0 = arith.constant 0 : i32
    return %arg0, %c0_i32 : i32, i32
  }
}

</mosaic_0001>

<bundles_post_ra>
// kernel: tpu_custom_call.1
= control target key start
LH: loop header
LB: loop body
LE: loop exit
PB: predicated region body
PF: predicated region fallthrough
CT: control target
= control target key end

     0   :  { %vm36_vm0 = vcmask 261120   ;;  %vm230_vm1 = vcmask 523264   ;;  %vm448_vm2 = vcmask 64512   ;;  %s906_s1 = inlined_call_operand.vmem [shape: f32[32,64], index: 1, kind: input, shape index: {}]   ;;  %s907_s0 = inlined_call_operand.vmem [shape: f32[128,32], index: 0, kind: input, shape index: {}]   ;;  %s908_s2 = inlined_call_operand.vmem [shape: f32[64,8], index: 2, kind: input, shape index: {}]   ;;  %s909_s3 = inlined_call_operand.vmem [shape: f32[128,64], index: 3, kind: output, shape index: {0}]   ;;  %s910_s4 = inlined_call_operand.vmem [shape: f32[128,8], index: 4, kind: output, shape index: {1}]  }
   0x1   :  { %v35_v0 = vld [vmem:[%s906_s1 + $0x18] sm:$0xff]  ;;  %v34_v1 = vld [vmem:[%s906_s1 + $0x10] sm:$0xff]  ;;  %v16_v2 = vld [vmem:[%s907_s0] sm:$0xff] }
   0x2   :  { %549 = vmatprep.subr.mxu0 %v35_v0  ;;  %v33_v3 = vld [vmem:[%s906_s1 + $0x8] sm:$0xff]  ;;  %557 = vmatprep.mubr.msk.f32.mxu0 %vm36_vm0, %v16_v2  ;;  %v32_v4 = vld [vmem:[%s906_s1] sm:$0xff]  ;;  %v254_v6 = vld [vmem:[%s908_s2 + $0x38] sm:$0xff] }
   0x3   :  { %550 = vmatpush3.msra.mxu0 %v35_v0  ;;  %v17_v5 = vld [vmem:[%s907_s0 + $0x8] sm:$0xff]  ;;  %v18_v7 = vld [vmem:[%s907_s0 + $0x10] sm:$0xff]  ;;  %621 = vmatprep.subr.mxu1 %v254_v6  ;;  %v19_v9 = vld [vmem:[%s907_s0 + $0x18] sm:$0xff] }
   0x4   :  { %551 = vmatprep.subr.mxu0 %v34_v1  ;;  %v253_v8 = vld [vmem:[%s908_s2 + $0x30] sm:$0xff]  ;;  %629 = vmatpush3.msra.mxu1 %v254_v6  ;;  %v252_v10 = vld [vmem:[%s908_s2 + $0x28] sm:$0xff]  ;;  %v20_v11 = vld [vmem:[%s907_s0 + $0x20] sm:$0xff] }
   0x5   :  { %552 = vmatpush3.msra.mxu0 %v34_v1  ;;  %622 = vmatprep.subr.mxu1 %v253_v8  ;;  %v251_v12 = vld [vmem:[%s908_s2 + $0x20] sm:$0xff]  ;;  %v21_v13 = vld [vmem:[%s907_s0 + $0x28] sm:$0xff]  ;;  %v250_v14 = vld [vmem:[%s908_s2 + $0x18] sm:$0xff] }
   0x6   :  { %553 = vmatprep.subr.mxu0 %v33_v3  ;;  %630 = vmatpush3.msra.mxu1 %v253_v8  ;;  %v22_v15 = vld [vmem:[%s907_s0 + $0x30] sm:$0xff]  ;;  %v23_v17 = vld [vmem:[%s907_s0 + $0x38] sm:$0xff]  ;;  %v24_v18 = vld [vmem:[%s907_s0 + $0x40] sm:$0xff] }
   0x7   :  { %554 = vmatpush3.msra.mxu0 %v33_v3  ;;  %623 = vmatprep.subr.mxu1 %v252_v10  ;;  %v249_v16 = vld [vmem:[%s908_s2 + $0x10] sm:$0xff]  ;;  %v25_v19 = vld [vmem:[%s907_s0 + $0x48] sm:$0xff]  ;;  %v27_v21 = vld [vmem:[%s907_s0 + $0x58] sm:$0xff] }
   0x8   :  { %555 = vmatprep.subr.mxu0 %v32_v4  ;;  %631 = vmatpush3.msra.mxu1 %v252_v10  ;;  %v26_v20 = vld [vmem:[%s907_s0 + $0x50] sm:$0xff]  ;;  %v28_v22 = vld [vmem:[%s907_s0 + $0x60] sm:$0xff]  ;;  %v29_v23 = vld [vmem:[%s907_s0 + $0x68] sm:$0xff] }
   0x9   :  { %556 = vmatpush3.msra.mxu0 %v32_v4  ;;  %624 = vmatprep.subr.mxu1 %v251_v12  ;;  %v30_v24 = vld [vmem:[%s907_s0 + $0x70] sm:$0xff]  ;;  %v31_v25 = vld [vmem:[%s907_s0 + $0x78] sm:$0xff]  ;;  %v248_v26 = vld [vmem:[%s908_s2 + $0x8] sm:$0xff] }
   0xa   :  { %558 = vmatmul.mubr.msk.f32.vlgmr.msra.gmra.mxu0 %vm36_vm0, %v17_v5  ;;  %581 = vmatprep.subr.mxu0 %v254_v6  ;;  %v247_v27 = vld [vmem:[%s908_s2] sm:$0xff] }
   0xb   :  { %560 = vmatprep.mubr.msk.f32.mxu0 %vm36_vm0, %v18_v7  ;;  %582 = vmatpush3.msra.mxu0 %v254_v6 }
   0xc   :  { %583 = vmatprep.subr.mxu0 %v253_v8  ;;  %632 = vmatpush3.msra.mxu1 %v251_v12 }
   0xd   :  { %584 = vmatpush3.msra.mxu0 %v253_v8  ;;  %625 = vmatprep.subr.mxu1 %v250_v14 }
   0xe   :  { %561 = vmatmul.mubr.msk.f32.gmra.mxu0 %vm36_vm0, %v19_v9  ;;  %585 = vmatprep.subr.mxu0 %v252_v10 }
   0xf   :  { %563 = vmatprep.mubr.msk.f32.mxu0 %vm36_vm0, %v20_v11  ;;  %586 = vmatpush3.msra.mxu0 %v252_v10 }
  0x10   :  { %587 = vmatprep.subr.mxu0 %v251_v12  ;;  %633 = vmatpush3.msra.mxu1 %v250_v14 }
  0x11   :  { %588 = vmatpush3.msra.mxu0 %v251_v12  ;;  %626 = vmatprep.subr.mxu1 %v249_v16 }
  0x12   :  { %564 = vmatmul.mubr.msk.f32.gmra.mxu0 %vm36_vm0, %v21_v13  ;;  %589 = vmatprep.subr.mxu0 %v250_v14 }
  0x13   :  { %566 = vmatprep.mubr.msk.f32.mxu0 %vm36_vm0, %v22_v15  ;;  %590 = vmatpush3.msra.mxu0 %v250_v14 }
  0x14   :  { %591 = vmatprep.subr.mxu0 %v249_v16  ;;  %634 = vmatpush3.msra.mxu1 %v249_v16 }
  0x15   :  { %592 = vmatpush3.msra.mxu0 %v249_v16  ;;  %627 = vmatprep.subr.mxu1 %v248_v26 }
  0x16   :  { %567 = vmatmul.mubr.msk.f32.gmra.mxu0 %vm36_vm0, %v23_v17  ;;  %593 = vmatprep.subr.mxu0 %v248_v26 }
  0x17   :  { %569 = vmatprep.mubr.msk.f32.mxu0 %vm36_vm0, %v24_v18  ;;  %594 = vmatpush3.msra.mxu0 %v248_v26 }
  0x18   :  { %635 = vmatpush3.msra.mxu1 %v248_v26  ;;  %595 = vmatprep.subr.mxu0 %v247_v27 }
  0x19   :  { %628 = vmatprep.subr.mxu1 %v247_v27  ;;  %596 = vmatpush3.msra.mxu0 %v247_v27 }
  0x1a   :  { %570 = vmatmul.mubr.msk.f32.gmra.mxu0 %vm36_vm0, %v25_v19  ;;  %636 = vmatpush3.msra.mxu1 %v247_v27 }
  0x1b   :  { %572 = vmatprep.mubr.msk.f32.mxu0 %vm36_vm0, %v26_v20 }
  0x1e   :  { %573 = vmatmul.mubr.msk.f32.gmra.mxu0 %vm36_vm0, %v27_v21 }
  0x1f   :  { %575 = vmatprep.mubr.msk.f32.mxu0 %vm36_vm0, %v28_v22 }
  0x22   :  { %576 = vmatmul.mubr.msk.f32.gmra.mxu0 %vm36_vm0, %v29_v23 }
  0x23   :  { %578 = vmatprep.mubr.msk.f32.mxu0 %vm36_vm0, %v30_v24 }
  0x26   :  { %579 = vmatmul.mubr.msk.f32.gmra.mxu0 %vm36_vm0, %v31_v25 }
  0xca   :  { %v559_v28 = vpop.f32.mrf.mxu0 }
  0xcb   :  { %232 = vst.msk [vmem:[%s909_s3 + $0x8] sm:$0xff] %vm230_vm1, %v559_v28 }
  0xcc   :  { %v151_v29 = vpop.f32.mrf.mxu0 }
  0xcd   :  { %231 = vst.msk [vmem:[%s909_s3] sm:$0xff] %vm230_vm1, %v151_v29  ;;  %597 = vmatprep.mubr.msk.f32.mxu0 %vm230_vm1, %v151_v29 }
  0xce   :  { %v562_v30 = vpop.f32.mrf.mxu0  ;;  %598 = vmatmul.mubr.msk.f32.vlgmr.msra.gmra.mxu0 %vm230_vm1, %v559_v28 }
  0xcf   :  { %234 = vst.msk [vmem:[%s909_s3 + $0x18] sm:$0xff] %vm230_vm1, %v562_v30 }
  0xd0   :  { %v161_v31 = vpop.f32.mrf.mxu0 }
  0xd1   :  { %233 = vst.msk [vmem:[%s909_s3 + $0x10] sm:$0xff] %vm230_vm1, %v161_v31  ;;  %600 = vmatprep.mubr.msk.f32.mxu1 %vm230_vm1, %v161_v31 }
  0xd2   :  { %v565_v32 = vpop.f32.mrf.mxu0  ;;  %601 = vmatmul.mubr.msk.f32.vlgmr.msra.gmra.mxu1 %vm230_vm1, %v562_v30 }
  0xd3   :  { %236 = vst.msk [vmem:[%s909_s3 + $0x28] sm:$0xff] %vm230_vm1, %v565_v32 }
  0xd4   :  { %v171_v33 = vpop.f32.mrf.mxu0 }
  0xd5   :  { %235 = vst.msk [vmem:[%s909_s3 + $0x20] sm:$0xff] %vm230_vm1, %v171_v33  ;;  %603 = vmatprep.mubr.msk.f32.mxu1 %vm230_vm1, %v171_v33 }
  0xd6   :  { %v568_v34 = vpop.f32.mrf.mxu0  ;;  %604 = vmatmul.mubr.msk.f32.gmra.mxu1 %vm230_vm1, %v565_v32 }
  0xd7   :  { %238 = vst.msk [vmem:[%s909_s3 + $0x38] sm:$0xff] %vm230_vm1, %v568_v34 }
  0xd8   :  { %v181_v35 = vpop.f32.mrf.mxu0 }
  0xd9   :  { %237 = vst.msk [vmem:[%s909_s3 + $0x30] sm:$0xff] %vm230_vm1, %v181_v35  ;;  %606 = vmatprep.mubr.msk.f32.mxu1 %vm230_vm1, %v181_v35 }
  0xda   :  { %v571_v36 = vpop.f32.mrf.mxu0  ;;  %607 = vmatmul.mubr.msk.f32.gmra.mxu1 %vm230_vm1, %v568_v34 }
  0xdb   :  { %240 = vst.msk [vmem:[%s909_s3 + $0x48] sm:$0xff] %vm230_vm1, %v571_v36 }
  0xdc   :  { %v191_v37 = vpop.f32.mrf.mxu0 }
  0xdd   :  { %239 = vst.msk [vmem:[%s909_s3 + $0x40] sm:$0xff] %vm230_vm1, %v191_v37  ;;  %609 = vmatprep.mubr.msk.f32.mxu1 %vm230_vm1, %v191_v37 }
  0xde   :  { %v574_v38 = vpop.f32.mrf.mxu0  ;;  %610 = vmatmul.mubr.msk.f32.gmra.mxu1 %vm230_vm1, %v571_v36 }
  0xdf   :  { %242 = vst.msk [vmem:[%s909_s3 + $0x58] sm:$0xff] %vm230_vm1, %v574_v38 }
  0xe0   :  { %v201_v39 = vpop.f32.mrf.mxu0 }
  0xe1   :  { %241 = vst.msk [vmem:[%s909_s3 + $0x50] sm:$0xff] %vm230_vm1, %v201_v39  ;;  %612 = vmatprep.mubr.msk.f32.mxu1 %vm230_vm1, %v201_v39 }
  0xe2   :  { %v577_v40 = vpop.f32.mrf.mxu0  ;;  %613 = vmatmul.mubr.msk.f32.gmra.mxu1 %vm230_vm1, %v574_v38 }
  0xe3   :  { %244 = vst.msk [vmem:[%s909_s3 + $0x68] sm:$0xff] %vm230_vm1, %v577_v40 }
  0xe4   :  { %v211_v41 = vpop.f32.mrf.mxu0 }
  0xe5   :  { %243 = vst.msk [vmem:[%s909_s3 + $0x60] sm:$0xff] %vm230_vm1, %v211_v41  ;;  %615 = vmatprep.mubr.msk.f32.mxu1 %vm230_vm1, %v211_v41 }
  0xe6   :  { %v580_v42 = vpop.f32.mrf.mxu0  ;;  %616 = vmatmul.mubr.msk.f32.gmra.mxu1 %vm230_vm1, %v577_v40 }
  0xe7   :  { %246 = vst.msk [vmem:[%s909_s3 + $0x78] sm:$0xff] %vm230_vm1, %v580_v42 }
  0xe8   :  { %v221_v43 = vpop.f32.mrf.mxu0 }
  0xe9   :  { %245 = vst.msk [vmem:[%s909_s3 + $0x70] sm:$0xff] %vm230_vm1, %v221_v43  ;;  %618 = vmatprep.mubr.msk.f32.mxu1 %vm230_vm1, %v221_v43 }
  0xea   :  { %619 = vmatmul.mubr.msk.f32.gmra.mxu1 %vm230_vm1, %v580_v42 }
 0x18e   :  { %v599_v44 = vpop.f32.mrf.mxu0 }
 0x18f   :  { %450 = vst.msk [vmem:[%s910_s4 + $0x8] sm:$0xff] %vm448_vm2, %v599_v44 }
 0x190   :  { %v369_v45 = vpop.f32.mrf.mxu0 }
 0x191   :  { %449 = vst.msk [vmem:[%s910_s4] sm:$0xff] %vm448_vm2, %v369_v45 }
 0x192   :  { %v602_v46 = vpop.f32.mrf.mxu1 }
 0x193   :  { %452 = vst.msk [vmem:[%s910_s4 + $0x18] sm:$0xff] %vm448_vm2, %v602_v46 }
 0x194   :  { %v379_v47 = vpop.f32.mrf.mxu1 }
 0x195   :  { %451 = vst.msk [vmem:[%s910_s4 + $0x10] sm:$0xff] %vm448_vm2, %v379_v47 }
 0x196   :  { %v605_v48 = vpop.f32.mrf.mxu1 }
 0x197   :  { %454 = vst.msk [vmem:[%s910_s4 + $0x28] sm:$0xff] %vm448_vm2, %v605_v48 }
 0x198   :  { %v389_v49 = vpop.f32.mrf.mxu1 }
 0x199   :  { %453 = vst.msk [vmem:[%s910_s4 + $0x20] sm:$0xff] %vm448_vm2, %v389_v49 }
 0x19a   :  { %v608_v50 = vpop.f32.mrf.mxu1 }
 0x19b   :  { %456 = vst.msk [vmem:[%s910_s4 + $0x38] sm:$0xff] %vm448_vm2, %v608_v50 }
 0x19c   :  { %v399_v51 = vpop.f32.mrf.mxu1 }
 0x19d   :  { %455 = vst.msk [vmem:[%s910_s4 + $0x30] sm:$0xff] %vm448_vm2, %v399_v51 }
 0x19e   :  { %v611_v52 = vpop.f32.mrf.mxu1 }
 0x19f   :  { %458 = vst.msk [vmem:[%s910_s4 + $0x48] sm:$0xff] %vm448_vm2, %v611_v52 }
 0x1a0   :  { %v409_v53 = vpop.f32.mrf.mxu1 }
 0x1a1   :  { %457 = vst.msk [vmem:[%s910_s4 + $0x40] sm:$0xff] %vm448_vm2, %v409_v53 }
 0x1a2   :  { %v614_v54 = vpop.f32.mrf.mxu1 }
 0x1a3   :  { %460 = vst.msk [vmem:[%s910_s4 + $0x58] sm:$0xff] %vm448_vm2, %v614_v54 }
 0x1a4   :  { %v419_v55 = vpop.f32.mrf.mxu1 }
 0x1a5   :  { %459 = vst.msk [vmem:[%s910_s4 + $0x50] sm:$0xff] %vm448_vm2, %v419_v55 }
 0x1a6   :  { %v617_v56 = vpop.f32.mrf.mxu1 }
 0x1a7   :  { %462 = vst.msk [vmem:[%s910_s4 + $0x68] sm:$0xff] %vm448_vm2, %v617_v56 }
 0x1a8   :  { %v429_v57 = vpop.f32.mrf.mxu1 }
 0x1a9   :  { %461 = vst.msk [vmem:[%s910_s4 + $0x60] sm:$0xff] %vm448_vm2, %v429_v57 }
 0x1aa   :  { %v620_v58 = vpop.f32.mrf.mxu1 }
 0x1ab   :  { %464 = vst.msk [vmem:[%s910_s4 + $0x78] sm:$0xff] %vm448_vm2, %v620_v58 }
 0x1ac   :  { %v439_v59 = vpop.f32.mrf.mxu1 }
 0x1ad   :  { %463 = vst.msk [vmem:[%s910_s4 + $0x70] sm:$0xff] %vm448_vm2, %v439_v59 }

</bundles_post_ra>
